<compile_context>
chip_gen: v7x
topology: tpu7x:2x2x1
jax: 0.10.0
libtpu: 0.0.40
codegen_flags: <defaults>
</compile_context>

<pallas_src>
import numpy as np
import jax
import jax.numpy as jnp
from jax.experimental import pallas as pl
from jax.experimental.pallas import tpu as pltpu


# ------------------------------ helpers ------------------------------------ #

def _round_up(x, m):
    return ((x + m - 1) // m) * m


def _block_complex(w):
    """complex (Co, Ci) -> real (2*Co, 2*Ci) block [[Wr, -Wi], [Wi, Wr]]."""
    wr = jnp.real(w).astype(jnp.float32)
    wi = jnp.imag(w).astype(jnp.float32)
    top = jnp.concatenate([wr, -wi], axis=1)
    bot = jnp.concatenate([wi, wr], axis=1)
    return jnp.concatenate([top, bot], axis=0)


# ----------------------------- Pallas kernel -------------------------------- #

def _make_fused_kernel(shifts, e_off, l1, l2):
    """Fused DoubleConv kernel for fixed static geometry.

    shifts : 9 static flat offsets dy*Wp+dx of the 3x3 taps
    e_off  : 2*Wp+2 = max tap shift = flat offset of the un-padded pixel (u, v)
    l1     : flat length of the stage-1 (conv1) output slab
    l2     : flat length of the stage-2 (final) output slab (multiple of 128)
    """

    def kernel(xf_ref, w1_ref, w2s_ref, out_ref):
        f = xf_ref[0]        # (2*Cin, L_F)  circular-padded, flattened, re|im stacked
        w1 = w1_ref[...]     # (2*Cmid, 9*2*Cin)            block-complex, taps on K
        w2s = w2s_ref[...]   # (2*Cout, 9*2*Cmid + 2*Cin)   conv2 taps + 1x1 shortcut on K

        # ---- stage 1: conv1 (all 9 taps in ONE block-complex GEMM) + CReLU ----
        a1 = jnp.concatenate([f[:, s:s + l1] for s in shifts], axis=0)
        g = jnp.dot(w1, a1, preferred_element_type=jnp.float32)
        g = jnp.maximum(g, 0.0).astype(f.dtype)          # CReLU on stacked re/im

        # ---- stage 2: conv2 taps + fused 1x1 shortcut in ONE GEMM, add, CReLU ----
        a2 = jnp.concatenate([g[:, s:s + l2] for s in shifts]
                             + [f[:, e_off:e_off + l2]], axis=0)
        y = jnp.dot(w2s, a2, preferred_element_type=jnp.float32)
        out_ref[0] = jnp.maximum(y, 0.0).astype(out_ref.dtype)

    return kernel


# ------------------------------ JAX wrapper --------------------------------- #

def double_conv_forward(x, w1, w2, ws, *, use_bf16=False):
    """x: (N, Cin, H, W) complex64 (NCHW).  Weights complex64:
       w1 (Cmid, Cin, 3, 3), w2 (Cout, Cmid, 3, 3), ws (Cout, Cin, 1, 1).
       Returns (N, Cout, H, W) complex64."""
    N, Cin, H, W = x.shape
    Cmid, Cout = w1.shape[0], w2.shape[0]

    # Flat "padded width" geometry: circular pad 2 on H and W, flatten with the
    # padded row stride Wp so every 3x3 tap of BOTH stacked convs is a contiguous
    # lane shift.  Junk columns/rows only ever feed junk outputs (stripped below).
    Wp, Hp = W + 4, H + 4
    e_off = 2 * Wp + 2
    l2 = _round_up(H * Wp, 128)              # final-output slab (lane-dense store)
    l1 = _round_up(l2 + e_off, 128)          # conv1-output slab
    l_f = _round_up(l1 + e_off, 128)         # flat padded-input slab
    shifts = [dy * Wp + dx for dy in range(3) for dx in range(3)]

    cdt = jnp.bfloat16 if use_bf16 else jnp.float32   # bf16 loosens tolerance ~1e-2

    # ---- activations: stack real|imag on channels, circular pad, flatten, pad ----
    xr = jnp.real(x).astype(jnp.float32)
    xi = jnp.imag(x).astype(jnp.float32)
    xs = jnp.concatenate([xr, xi], axis=1)                          # (N, 2Cin, H, W)
    xp = jnp.pad(xs, ((0, 0), (0, 0), (2, 2), (2, 2)), mode="wrap")  # circular pad 2
    xf = xp.reshape(N, 2 * Cin, Hp * Wp)
    xf = jnp.pad(xf, ((0, 0), (0, 0), (0, l_f - Hp * Wp))).astype(cdt)

    # ---- weights: block-complex per tap, taps (+ shortcut) concatenated on K ----
    w1_cat = jnp.concatenate(
        [_block_complex(w1[:, :, dy, dx]) for dy in range(3) for dx in range(3)],
        axis=1).astype(cdt)                                         # (2Cmid, 18*Cin)
    w2s_cat = jnp.concatenate(
        [_block_complex(w2[:, :, dy, dx]) for dy in range(3) for dx in range(3)]
        + [_block_complex(ws[:, :, 0, 0])],
        axis=1).astype(cdt)                                         # (2Cout, 18*Cmid+2Cin)

    kernel = _make_fused_kernel(shifts, e_off, l1, l2)

    flops = int(2 * N * ((2 * Cmid) * w1_cat.shape[1] * l1
                         + (2 * Cout) * w2s_cat.shape[1] * l2))
    bytes_accessed = int(xf.size * xf.dtype.itemsize
                         + N * (w1_cat.size + w2s_cat.size) * w1_cat.dtype.itemsize
                         + N * (2 * Cout) * l2 * 4)

    out_flat = pl.pallas_call(
        kernel,
        out_shape=jax.ShapeDtypeStruct((N, 2 * Cout, l2), jnp.float32),
        grid=(N,),
        in_specs=[
            pl.BlockSpec((1, 2 * Cin, l_f), lambda n: (n, 0, 0)),
            pl.BlockSpec((2 * Cmid, w1_cat.shape[1]), lambda n: (0, 0)),
            pl.BlockSpec((2 * Cout, w2s_cat.shape[1]), lambda n: (0, 0)),
        ],
        out_specs=pl.BlockSpec((1, 2 * Cout, l2), lambda n: (n, 0, 0)),
        compiler_params=pltpu.CompilerParams(
            dimension_semantics=("parallel",),
            vmem_limit_bytes=48 * 1024 * 1024),      # > v5e/v6e defaults, < v7x 64 MiB
        cost_estimate=pl.CostEstimate(flops=flops, transcendentals=0,
                                      bytes_accessed=bytes_accessed),
    )(xf, w1_cat, w2s_cat)

    # strip junk columns, split stacked real/imag, back to NCHW complex64
    o = out_flat[:, :, :H * Wp].reshape(N, 2, Cout, H, Wp)[..., :W]
    return jax.lax.complex(o[:, 0], o[:, 1])


# -------------------------- pure-JAX reference ------------------------------ #

def _ref_forward(x, w1, w2, ws):
    """Independent NCHW reference using real/imag decomposition."""
    N, Cin, H, W = x.shape
    xr = jnp.real(x).astype(jnp.float32)
    xi = jnp.imag(x).astype(jnp.float32)

    def conv3_circ(ar, ai, w):
        wr = jnp.real(w).astype(jnp.float32)
        wi = jnp.imag(w).astype(jnp.float32)
        apr = jnp.pad(ar, ((0, 0), (0, 0), (1, 1), (1, 1)), mode="wrap")
        api = jnp.pad(ai, ((0, 0), (0, 0), (1, 1), (1, 1)), mode="wrap")
        yr = jnp.zeros((N, w.shape[0], H, W), jnp.float32)
        yi = jnp.zeros_like(yr)
        for dy in range(3):
            for dx in range(3):
                pr = apr[:, :, dy:dy + H, dx:dx + W]
                pi = api[:, :, dy:dy + H, dx:dx + W]
                yr = yr + jnp.einsum('nchw,oc->nohw', pr, wr[:, :, dy, dx]) \
                        - jnp.einsum('nchw,oc->nohw', pi, wi[:, :, dy, dx])
                yi = yi + jnp.einsum('nchw,oc->nohw', pr, wi[:, :, dy, dx]) \
                        + jnp.einsum('nchw,oc->nohw', pi, wr[:, :, dy, dx])
        return yr, yi

    h_r, h_i = conv3_circ(xr, xi, w1)
    h_r, h_i = jnp.maximum(h_r, 0.0), jnp.maximum(h_i, 0.0)
    o_r, o_i = conv3_circ(h_r, h_i, w2)

    wsr = jnp.real(ws).astype(jnp.float32)[:, :, 0, 0]
    wsi = jnp.imag(ws).astype(jnp.float32)[:, :, 0, 0]
    s_r = jnp.einsum('nchw,oc->nohw', xr, wsr) - jnp.einsum('nchw,oc->nohw', xi, wsi)
    s_i = jnp.einsum('nchw,oc->nohw', xr, wsi) + jnp.einsum('nchw,oc->nohw', xi, wsr)

    o_r = jnp.maximum(o_r + s_r, 0.0)
    o_i = jnp.maximum(o_i + s_i, 0.0)
    return jax.lax.complex(o_r, o_i)


# --------------------------------- main ------------------------------------- #

if __name__ == "__main__":
    key = jax.random.PRNGKey(0)
    N, Cin, Cmid, Cout, H, W = 2, 4, 8, 8, 16, 16
    ks = jax.random.split(key, 8)

    def cinit(kr, ki, shape, fan_in):
        scale = 1.0 / np.sqrt(float(fan_in))
        return jax.lax.complex(jax.random.normal(kr, shape, jnp.float32) * scale,
                               jax.random.normal(ki, shape, jnp.float32) * scale)

    x  = cinit(ks[0], ks[1], (N, Cin, H, W), 1.0)            # NCHW complex64
    w1 = cinit(ks[2], ks[3], (Cmid, Cin, 3, 3), 9 * Cin)     # conv1 weight
    w2 = cinit(ks[4], ks[5], (Cout, Cmid, 3, 3), 9 * Cmid)   # conv2 weight
    ws = cinit(ks[6], ks[7], (Cout, Cin, 1, 1), Cin)         # shortcut 1x1 weight

    out = jax.block_until_ready(double_conv_forward(x, w1, w2, ws))
    ref = jax.block_until_ready(_ref_forward(x, w1, w2, ws))

    assert out.shape == (N, Cout, H, W) and out.dtype == jnp.complex64
    np.testing.assert_allclose(np.asarray(out), np.asarray(ref), rtol=2e-4, atol=2e-4)
    print("KERNEL_OK")
</pallas_src>

<mosaic_0001>
module attributes {stable_mosaic.version = 11 : i64} {
  func.func @kernel(%arg0: i32, %arg1: memref<1x8x640xf32, #tpu.memory_space<vmem>>, %arg2: memref<16x72xf32, #tpu.memory_space<vmem>>, %arg3: memref<16x152xf32, #tpu.memory_space<vmem>>, %arg4: memref<1x16x384xf32, #tpu.memory_space<vmem>>) attributes {dimension_semantics = [#tpu.dimension_semantics<parallel>], iteration_bounds = array<i64: 2>, scalar_prefetch = 0 : i64, scratch_operands = 0 : i64, tpu.core_type = #tpu.core_type<tc>, window_params = [{transform_indices = @transform_0, window_bounds = array<i64: 1, 8, 640>}, {pipeline_mode = #tpu.pipeline_mode<synchronous>, transform_indices = @transform_1, window_bounds = array<i64: 16, 72>}, {pipeline_mode = #tpu.pipeline_mode<synchronous>, transform_indices = @transform_2, window_bounds = array<i64: 16, 152>}, {transform_indices = @transform_3, window_bounds = array<i64: 1, 16, 384>}]} {
    %c0 = arith.constant 0 : index
    %c0_0 = arith.constant 0 : index
    %c0_1 = arith.constant 0 : index
    %0 = vector.load %arg1[%c0, %c0_0, %c0_1] : memref<1x8x640xf32, #tpu.memory_space<vmem>>, vector<1x8x640xf32>
    %1 = vector.shape_cast %0 : vector<1x8x640xf32> to vector<8x640xf32>
    %c0_2 = arith.constant 0 : index
    %c0_3 = arith.constant 0 : index
    %2 = vector.load %arg2[%c0_2, %c0_3] : memref<16x72xf32, #tpu.memory_space<vmem>>, vector<16x72xf32>
    %c0_4 = arith.constant 0 : index
    %c0_5 = arith.constant 0 : index
    %3 = vector.load %arg3[%c0_4, %c0_5] : memref<16x152xf32, #tpu.memory_space<vmem>>, vector<16x152xf32>
    %4 = vector.extract_strided_slice %1 {offsets = [0, 0], sizes = [8, 512], strides = [1, 1]} : vector<8x640xf32> to vector<8x512xf32>
    %5 = vector.extract_strided_slice %1 {offsets = [0, 1], sizes = [8, 512], strides = [1, 1]} : vector<8x640xf32> to vector<8x512xf32>
    %6 = vector.extract_strided_slice %1 {offsets = [0, 2], sizes = [8, 512], strides = [1, 1]} : vector<8x640xf32> to vector<8x512xf32>
    %7 = vector.extract_strided_slice %1 {offsets = [0, 20], sizes = [8, 512], strides = [1, 1]} : vector<8x640xf32> to vector<8x512xf32>
    %8 = vector.extract_strided_slice %1 {offsets = [0, 21], sizes = [8, 512], strides = [1, 1]} : vector<8x640xf32> to vector<8x512xf32>
    %9 = vector.extract_strided_slice %1 {offsets = [0, 22], sizes = [8, 512], strides = [1, 1]} : vector<8x640xf32> to vector<8x512xf32>
    %10 = vector.extract_strided_slice %1 {offsets = [0, 40], sizes = [8, 512], strides = [1, 1]} : vector<8x640xf32> to vector<8x512xf32>
    %11 = vector.extract_strided_slice %1 {offsets = [0, 41], sizes = [8, 512], strides = [1, 1]} : vector<8x640xf32> to vector<8x512xf32>
    %12 = vector.extract_strided_slice %1 {offsets = [0, 42], sizes = [8, 512], strides = [1, 1]} : vector<8x640xf32> to vector<8x512xf32>
    %13 = tpu.concatenate %4, %5, %6, %7, %8, %9, %10, %11, %12 in 0 : vector<8x512xf32>, vector<8x512xf32>, vector<8x512xf32>, vector<8x512xf32>, vector<8x512xf32>, vector<8x512xf32>, vector<8x512xf32>, vector<8x512xf32>, vector<8x512xf32> -> vector<72x512xf32>
    %cst = arith.constant dense<0.000000e+00> : vector<16x512xf32>
    %14 = tpu.matmul %2, %13, %cst {dimension_numbers = #tpu.dot_dimension_numbers<[1], [0], [0], [1], [0, 0, 1, 1], [], []>} : vector<16x72xf32>, vector<72x512xf32>, vector<16x512xf32> -> vector<16x512xf32>
    %cst_6 = arith.constant 0.000000e+00 : f32
    %15 = vector.broadcast %cst_6 : f32 to vector<16x512xf32>
    %16 = arith.maximumf %14, %15 : vector<16x512xf32>
    %17 = vector.extract_strided_slice %16 {offsets = [0, 0], sizes = [16, 384], strides = [1, 1]} : vector<16x512xf32> to vector<16x384xf32>
    %18 = vector.extract_strided_slice %16 {offsets = [0, 1], sizes = [16, 384], strides = [1, 1]} : vector<16x512xf32> to vector<16x384xf32>
    %19 = vector.extract_strided_slice %16 {offsets = [0, 2], sizes = [16, 384], strides = [1, 1]} : vector<16x512xf32> to vector<16x384xf32>
    %20 = vector.extract_strided_slice %16 {offsets = [0, 20], sizes = [16, 384], strides = [1, 1]} : vector<16x512xf32> to vector<16x384xf32>
    %21 = vector.extract_strided_slice %16 {offsets = [0, 21], sizes = [16, 384], strides = [1, 1]} : vector<16x512xf32> to vector<16x384xf32>
    %22 = vector.extract_strided_slice %16 {offsets = [0, 22], sizes = [16, 384], strides = [1, 1]} : vector<16x512xf32> to vector<16x384xf32>
    %23 = vector.extract_strided_slice %16 {offsets = [0, 40], sizes = [16, 384], strides = [1, 1]} : vector<16x512xf32> to vector<16x384xf32>
    %24 = vector.extract_strided_slice %16 {offsets = [0, 41], sizes = [16, 384], strides = [1, 1]} : vector<16x512xf32> to vector<16x384xf32>
    %25 = vector.extract_strided_slice %16 {offsets = [0, 42], sizes = [16, 384], strides = [1, 1]} : vector<16x512xf32> to vector<16x384xf32>
    %26 = vector.extract_strided_slice %1 {offsets = [0, 42], sizes = [8, 384], strides = [1, 1]} : vector<8x640xf32> to vector<8x384xf32>
    %27 = tpu.concatenate %17, %18, %19, %20, %21, %22, %23, %24, %25, %26 in 0 : vector<16x384xf32>, vector<16x384xf32>, vector<16x384xf32>, vector<16x384xf32>, vector<16x384xf32>, vector<16x384xf32>, vector<16x384xf32>, vector<16x384xf32>, vector<16x384xf32>, vector<8x384xf32> -> vector<152x384xf32>
    %cst_7 = arith.constant dense<0.000000e+00> : vector<16x384xf32>
    %28 = tpu.matmul %3, %27, %cst_7 {dimension_numbers = #tpu.dot_dimension_numbers<[1], [0], [0], [1], [0, 0, 1, 1], [], []>} : vector<16x152xf32>, vector<152x384xf32>, vector<16x384xf32> -> vector<16x384xf32>
    %cst_8 = arith.constant 0.000000e+00 : f32
    %29 = vector.broadcast %cst_8 : f32 to vector<16x384xf32>
    %30 = arith.maximumf %28, %29 : vector<16x384xf32>
    %c0_9 = arith.constant 0 : index
    %c0_10 = arith.constant 0 : index
    %c0_11 = arith.constant 0 : index
    %31 = vector.load %arg4[%c0_9, %c0_10, %c0_11] : memref<1x16x384xf32, #tpu.memory_space<vmem>>, vector<1x16x384xf32>
    %32 = vector.shape_cast %31 : vector<1x16x384xf32> to vector<16x384xf32>
    %33 = vector.shape_cast %30 : vector<16x384xf32> to vector<1x16x384xf32>
    tpu.vector_store %arg4[%c0_9, %c0_10, %c0_11], %33 {strides = array<i32>} : memref<1x16x384xf32, #tpu.memory_space<vmem>>, vector<1x16x384xf32>,
    return
  }
  func.func @transform_0(%arg0: i32) -> (i32, i32, i32) {
    %c0_i32 = arith.constant 0 : i32
    %c0_i32_0 = arith.constant 0 : i32
    %c0_i32_1 = arith.constant 0 : i32
    return %arg0, %c0_i32, %c0_i32_0 : i32, i32, i32
  }
  func.func @transform_1(%arg0: i32) -> (i32, i32) {
    %c0_i32 = arith.constant 0 : i32
    %c0_i32_0 = arith.constant 0 : i32
    %c0_i32_1 = arith.constant 0 : i32
    return %c0_i32, %c0_i32_0 : i32, i32
  }
  func.func @transform_2(%arg0: i32) -> (i32, i32) {
    %c0_i32 = arith.constant 0 : i32
    %c0_i32_0 = arith.constant 0 : i32
    %c0_i32_1 = arith.constant 0 : i32
    return %c0_i32, %c0_i32_0 : i32, i32
  }
  func.func @transform_3(%arg0: i32) -> (i32, i32, i32) {
    %c0_i32 = arith.constant 0 : i32
    %c0_i32_0 = arith.constant 0 : i32
    %c0_i32_1 = arith.constant 0 : i32
    return %arg0, %c0_i32, %c0_i32_0 : i32, i32, i32
  }
}

</mosaic_0001>

<bundles_post_ra>
// kernel: tpu_custom_call.1
= control target key start
LH: loop header
LB: loop body
LE: loop exit
PB: predicated region body
PF: predicated region fallthrough
CT: control target
= control target key end

     0   :  { %8 = vsyncpa [#allocation3], 0  ;;  %s2156_s0 = inlined_call_operand.hbm [shape: f32[2,8,640], index: 0, kind: input, shape index: {}]   ;;  %s2157_s1 = inlined_call_operand.hbm [shape: f32[16,72], index: 1, kind: input, shape index: {}]   ;;  %s2158_s2 = inlined_call_operand.hbm [shape: f32[16,152], index: 2, kind: input, shape index: {}]   ;;  %s2159_s3 = inlined_call_operand.hbm [shape: f32[2,16,384], index: 3, kind: output, shape index: {}]  }
   0x1   :  { %10 = vsyncpa [#allocation3 + $0x1], 0 }
   0x2   :  { %11 = vsyncpa [#allocation6], 0 }
   0x3   :  { %12 = vsyncpa [#allocation4], 0 }
   0x4   :  { %14 = vsyncpa [#allocation4 + $0x1], 0  ;;  %s1693_s12 = smov 0   ;;  %s1695_s13 = smov 0  }
   0x5   :  { %s1697_s14 = smov 0   ;;  %s1699_s15 = smov 0  }
   0x6 LB: > { %s1714_s16 = sadd.s32 4294967295, %s1651_s15   ;;  %s1062_s17 = sadd.s32 4294967294, %s1651_s15   ;;  %s1651_s15 = sphi %s1699_s15, %s2179_s15   ;;  %s1647_s14 = sphi %s1697_s14, %s2178_s14   ;;  %s1643_s13 = sphi %s1695_s13, %s2177_s13   ;;  %s1639_s12 = sphi %s1693_s12, %s2176_s12  }
   0x7   : > { %p40_p0 = scmp.ne.s32.totalorder %s1643_s13, %s1639_s12  ;;  %p2160_p1 = scmp.eq.s32.totalorder %s1714_s16, 0 }
   0x8   : > { %p112_p3 = scmp.eq.s32.totalorder %s1062_s17, 1  ;;  %p1063_p5 = scmp.ge.s32.totalorder %s1651_s15, 1 }
   0x9   : > { %p1723_p4 = por %p2160_p1, %p40_p0  ;;  %p119_p7 = scmp.lt.s32.totalorder %s1651_s15, 3 }
   0xa   : > { %p1728_p6 = por %p112_p3, %p40_p0  ;;  %s1653_s21 = smov [#allocation5]  }
   0xb   : > { %s2163_s18 = scalar_select %p1723_p4, 1, 0 }
   0xc   : > { %s2164_s19 = scalar_select %p1728_p6, 1, 0 }
   0xd   : > { %p1733_p8 = pnand %p1063_p5, %p119_p7  ;;  %s131_s22 = sshll.u32 %s1653_s21, 4  ;;  %s1737_s22 = int_to_ptr.vmem [resolvable:$true] %s131_s22 }
   0xe   : > { %s1654_s24 = smov [#allocation7]   ;;  %s1495_s28 = scalar_lea.hbm %s2157_s1, 256 }
   0xf   : > { %p1194_p9 = pneg %p1733_p8  ;;  %s144_s25 = sshll.u32 %s1654_s24, 4  ;;  %s1748_s25 = int_to_ptr.vmem [resolvable:$true] %s144_s25 }
  0x10   : > { %p1496_p12 = scmp.ne.s32.totalorder %s2157_s1, %s1495_s28  ;;  %p1502_p5 = scmp.lt.u32.totalorder %s1495_s28, %s2157_s1 }
  0x11   : > { %p1744_p11 = pnand %p1194_p9, %p2160_p1 }
  0x13   : > { %p1497_p13 = pneg %p1744_p11 }
  0x15   : > { %p1498_p0 = pnand %p1497_p13, %p1496_p12 }
  0x17   : > { %p1499_p3 = pneg %p1498_p0 }
  0x19   : > { %p1504_p7 = pnand %p1502_p5, %p1499_p3 }
  0x1b   : > { %1507 = shalt.err (!%p1504_p7)
}
  0x1c   : > { %s1508_s6 = scalar_lea.vmem %s1737_s22, 256  ;;  %p1516_p2 = scmp.lt.s32.totalorder %s1737_s22, %s1737_s22 }
  0x1d   : > { %p1509_p9 = scmp.ne.s32.totalorder %s1737_s22, %s1508_s6  ;;  %p1517_p12 = scmp.lt.s32.totalorder %s1508_s6, %s1508_s6 }
  0x1f   : > { %p1511_p10 = pnand %p1509_p9, %p1497_p13  ;;  %p1518_p0 = por %p1517_p12, %p1516_p2 }
  0x21   : > { %p1512_p1 = pneg %p1511_p10 }
  0x23   : > { %p1519_p6 = pnand %p1518_p0, %p1512_p1 }
  0x25   : > { %1522 = shalt.err (!%p1519_p6)
}
  0x26   : > { %s1655_s7 = smov 128   ;;  %s1656_s8 = smov 8  }
  0x27   : > { %1197 = dma.hbm_to_vmem [thread:$0]  (!%p1744_p11), %s2157_s1, 256, %s1737_s22, [#allocation6], %s1655_s7, %s1655_s7, %s1656_s8  }
  0x28   : > { %s1523_s21 = scalar_lea.hbm %s2158_s2, 512 }
  0x29   : > { %p1524_p2 = scmp.ne.s32.totalorder %s2158_s2, %s1523_s21  ;;  %p1530_p10 = scmp.lt.u32.totalorder %s1523_s21, %s2158_s2 }
  0x2b   : > { %p1526_p1 = pnand %p1524_p2, %p1497_p13 }
  0x2d   : > { %p1527_p6 = pneg %p1526_p1 }
  0x2f   : > { %p1532_p3 = pnand %p1530_p10, %p1527_p6 }
  0x31   : > { %1535 = shalt.err (!%p1532_p3)
}
  0x32   : > { %s1536_s22 = scalar_lea.vmem %s1748_s25, 512  ;;  %p1544_p12 = scmp.lt.s32.totalorder %s1748_s25, %s1748_s25 }
  0x33   : > { %p1537_p5 = scmp.ne.s32.totalorder %s1748_s25, %s1536_s22  ;;  %p1545_p0 = scmp.lt.s32.totalorder %s1536_s22, %s1536_s22 }
  0x35   : > { %p1539_p7 = pnand %p1537_p5, %p1497_p13  ;;  %p1546_p2 = por %p1545_p0, %p1544_p12 }
  0x37   : > { %p1540_p9 = pneg %p1539_p7 }
  0x39   : > { %p1547_p1 = pnand %p1546_p2, %p1540_p9 }
  0x3b   : > { %1550 = shalt.err (!%p1547_p1)
}
  0x3c   : > { %s1657_s29 = smov 256   ;;  %s1658_s30 = smov 16  }
  0x3d   : > { %1200 = dma.hbm_to_vmem [thread:$0]  (!%p1744_p11), %s2158_s2, 512, %s1748_s25, [#allocation6], %s1657_s29, %s1657_s29, %s1658_s30  }
  0x3e   : > { %s1803_s6 = sadd.s32 1, %s1651_s15   ;;  %s27_s8 = sadd.s32 1, %s1647_s14 }
  0x3f   : > { %s24_s7 = ssub.s32 %s1651_s15, %s1803_s6  ;;  %p34_p6 = scmp.ne.s32.totalorder %s1647_s14, %s1643_s13 }
  0x40   : > { %p25_p13 = scmp.eq.s32.totalorder %s24_s7, 0  ;;  %p35_p10 = scmp.eq.s32.totalorder %s1651_s15, 0 }
  0x41   : > { %p2167_p5 = scmp.eq.s32.totalorder %s1714_s16, 1  ;;  %p1211_p9 = scmp.lt.s32.totalorder %s1651_s15, 2 }
  0x42   : > { %s1812_s9 = scalar_select %p25_p13, %s1647_s14, %s27_s8  }
  0x43   : > { %p36_p3 = por %p35_p10, %p34_p6  ;;  %p1816_p7 = por %p2167_p5, %p34_p6 }
  0x44   : > { %s158_s23 = sand.u32 1, %s1647_s14   ;;  %s1178_s25 = smul.u32 640, %s1651_s15 }
  0x45   : > { %s2168_s10 = scalar_select %p1816_p7, 1, 0 }
  0x46   : > { %s1177_s11 = smul.u32 40, %s158_s23  ;;  %p1823_p11 = pnand %p1211_p9, %p36_p3 }
  0x47   : > { %s1830_s26 = scalar_lea.hbm %s2156_s0, %s1178_s25  ;;  %s159_s22 = scalar_lea.sflag [#allocation3], %s158_s23 }
  0x48   : > { %s162_s27 = scalar_lea.vmem [#allocation2], %s1177_s11  ;;  %s1551_s29 = scalar_lea.hbm %s1830_s26, 640 }
  0x49   : > { %s170_s28 = sshll.u32 %s162_s27, 4  ;;  %p1552_p12 = scmp.ne.s32.totalorder %s1830_s26, %s1551_s29  ;;  %s1832_s28 = int_to_ptr.vmem [resolvable:$true] %s170_s28 }
  0x4a   : > { %p1553_p0 = pneg %p1823_p11  ;;  %s1556_s5 = scalar_lea.hbm %s2156_s0, 1280 }
  0x4b   : > { %p1557_p13 = scmp.lt.u32.totalorder %s1830_s26, %s2156_s0  ;;  %p1558_p6 = scmp.lt.u32.totalorder %s1556_s5, %s1551_s29 }
  0x4c   : > { %p1554_p2 = pnand %p1553_p0, %p1552_p12  ;;  %p1560_p3 = scmp.lt.u32.totalorder %s1551_s29, %s1830_s26 }
  0x4d   : > { %p1559_p10 = por %p1558_p6, %p1557_p13 }
  0x4e   : > { %p1555_p1 = pneg %p1554_p2 }
  0x4f   : > { %p1561_p5 = por %p1560_p3, %p1559_p10 }
  0x51   : > { %p1562_p9 = pnand %p1561_p5, %p1555_p1 }
  0x53   : > { %1565 = shalt.err (!%p1562_p9)
}
  0x54   : > { %s1566_s23 = scalar_lea.vmem %s1832_s28, 640  ;;  %s1659_s11 = smov [#allocation2]  }
  0x55   : > { %p1567_p12 = scmp.ne.s32.totalorder %s1832_s28, %s1566_s23  ;;  %s1571_s25 = sshll.u32 %s1659_s11, 4  ;;  %s1572_s25 = int_to_ptr.vmem [resolvable:$false] %s1571_s25 }
  0x56   : > { %s1573_s21 = scalar_lea.vmem %s1572_s25, 1280  ;;  %p1574_p4 = scmp.lt.s32.totalorder %s1832_s28, %s1572_s25 }
  0x57   : > { %p1569_p2 = pnand %p1567_p12, %p1553_p0  ;;  %p1575_p13 = scmp.lt.s32.totalorder %s1573_s21, %s1566_s23 }
  0x59   : > { %p1570_p7 = pneg %p1569_p2  ;;  %p1576_p6 = por %p1575_p13, %p1574_p4 }
  0x5b   : > { %p1577_p10 = pnand %p1576_p6, %p1570_p7 }
  0x5d   : > { %1580 = shalt.err (!%p1577_p10)
}
  0x5e   : > { %1204 = dma.hbm_to_vmem [thread:$0]  (!%p1823_p11), %s1830_s26, 640, %s1832_s28, %s159_s22  }
  0x5f   : > { %179 = sbr.rel (%p1733_p8) target bundleno = 914 (0x392), region = 32  ;;  %s1862_s24 = sand.u32 (!%p1733_p8), 1, %s1643_s13  }
  0x60   : > { %s1179_s27 = smul.u32 (!%p1733_p8), 40, %s1862_s24  ;;  %s182_s29 = scalar_lea.sflag (!%p1733_p8), [#allocation3], %s1862_s24 }
  0x61   : > { %p2170_p4 = scmp.ne.s32.totalorder (!%p1733_p8), %s2163_s18, 0 }
  0x62   : > { %s185_s30 = scalar_lea.vmem (!%p1733_p8), [#allocation2], %s1179_s27 }
  0x66   : > { %1626 = dma.done.wait (%p2170_p4), %s182_s29, 640  }
  0x67   : > { %1628 = vsyncadd (%p2170_p4), %s182_s29, 4294966656  ;;  %p2171_p7 = scmp.eq.s32.totalorder %s1714_s16, 0 }
  0x69   : > { %1630 = dma.done.wait (%p2171_p7), [#allocation6], 768   ;;  %p2172_p11 = pmov %p2171_p7 }
  0x6a   : > { %v220_v0 = vld [vmem:[%s185_s30 + $0x20] sm:$0xff]  ;;  %v217_v1 = vld [vmem:[%s185_s30 + $0x8] sm:$0xff]  ;;  %v1874_v2 = vld [vmem:[%s185_s30 + $0x10] sm:$0xff]  ;;  %s1660_s20 = smov 127   ;;  %s1661_s18 = smov 126   ;;  %v1667_v7 = vmov 0.0  }
  0x6b   : > { %1632 = vsyncadd (%p2172_p11), [#allocation6], 4294966528  ;;  %240 = vrot.lane.b32.xlu1 %v220_v0, %s1660_s20  ;;  %v1265_v3 = vpack.i.bf16 %v1874_v2, %v217_v1  ;;  %v1878_v4 = vld [vmem:[%s185_s30] sm:$0xff]  ;;  %v1880_v5 = vld [vmem:[%s185_s30 + $0x18] sm:$0xff]  ;;  %s1662_s17 = smov 108   ;;  %s1663_s26 = smov 107   ;;  %455 = vmatprep.mubr.f32.mxu0 %v1667_v7 }
  0x6c   : > { %v1270_v6 = vpack.i.bf16 %v1880_v5, %v1878_v4  ;;  %s1664_s28 = smov 106   ;;  %s1665_s22 = smov 88   ;;  %532 = vmatprep.mubr.f32.mxu1 %v1667_v7  ;;  %vm242_vm0 = vcmask 1039360   ;;  %vm261_vm1 = vcmask 1031168   ;;  %vm280_vm2 = vcmask 883712  }
  0x6d   : > { %1266 = vrot.lane.b32.xlu0 %v1265_v3, %s1660_s20  ;;  %s1666_s4 = smov 87   ;;  %s1668_s5 = smov 86   ;;  %vm299_vm3 = vcmask 875520   ;;  %vm318_vm4 = vcmask 867328   ;;  %vm337_vm5 = vcmask 719872   ;;  %vm356_vm6 = vcmask 711680  }
  0x6e   : > { %vm375_vm7 = vcmask 703488   ;;  %vm384_vm8 = vcmask 588800   ;;  %vm785_vm9 = vcmask 195584   ;;  %s1180_s7 = smul.u32 48, %s1862_s24  ;;  %p2173_p0 = scmp.ne.s32.totalorder %s2168_s10, 0 }
  0x6f   : > { %1276 = vrot.lane.b32.xlu1 %v1265_v3, %s1661_s18  ;;  %s1181_s11 = smul.u32 768, %s1714_s16  ;;  %s957_s16 = scalar_lea.sflag [#allocation4], %s1862_s24 }
  0x70   : > { %s215_s8 = scalar_lea.vmem [#allocation8], %s1180_s7  ;;  %s1670_s30 = smov [#allocation8]  }
  0x71   : > { %1271 = vrot.lane.b32.xlu0 %v1270_v6, %s1660_s20  ;;  %s970_s23 = sshll.u32 %s215_s8, 4  ;;  %s2112_s27 = scalar_lea.hbm %s2159_s3, %s1181_s11  ;;  %s2107_s23 = int_to_ptr.vmem [resolvable:$true] %s970_s23 }
  0x72   : > { %s1581_s29 = scalar_lea.vmem %s2107_s23, 768 }
  0x73   : > { %1286 = vrot.lane.b32.xlu1 %v1270_v6, %s1661_s18  ;;  %p1582_p8 = scmp.ne.s32.totalorder %s2107_s23, %s1581_s29 }
  0x75   : > { %1281 = vrot.lane.b32.xlu0 %v1265_v3, %s1662_s17  ;;  %p1583_p1 = pnand %p1582_p8, %p2173_p0 }
  0x77   : > { %1291 = vrot.lane.b32.xlu1 %v1270_v6, %s1662_s17  ;;  %p1584_p3 = pneg %p1583_p1 }
  0x79   : > { %259 = vrot.lane.b32.xlu0 %v220_v0, %s1661_s18 }
  0x7b   : > { %1296 = vrot.lane.b32.xlu1 %v1265_v3, %s1663_s26 }
  0x7d   : > { %278 = vrot.lane.b32.xlu0 %v220_v0, %s1662_s17 }
  0x7f   : > { %1306 = vrot.lane.b32.xlu1 %v1270_v6, %s1663_s26 }
  0x81   : > { %1301 = vrot.lane.b32.xlu0 %v1265_v3, %s1664_s28 }
  0x83   : > { %1311 = vrot.lane.b32.xlu1 %v1270_v6, %s1664_s28 }
  0x85   : > { %297 = vrot.lane.b32.xlu0 %v220_v0, %s1663_s26 }
  0x87   : > { %1316 = vrot.lane.b32.xlu1 %v1265_v3, %s1665_s22 }
  0x89   : > { %316 = vrot.lane.b32.xlu0 %v220_v0, %s1664_s28 }
  0x8b   : > { %1326 = vrot.lane.b32.xlu1 %v1270_v6, %s1665_s22 }
  0x8d   : > { %1321 = vrot.lane.b32.xlu0 %v1265_v3, %s1666_s4 }
  0x8f   : > { %1331 = vrot.lane.b32.xlu1 %v1270_v6, %s1666_s4 }
  0x91   : > { %335 = vrot.lane.b32.xlu0 %v220_v0, %s1665_s22 }
  0x93   : > { %367 = vrot.lane.b32.xlu1 %v217_v1, %s1668_s5 }
  0x95   : > { %354 = vrot.lane.b32.xlu0 %v220_v0, %s1666_s4 }
  0x97   : > { %365 = vrot.lane.b32.xlu1 %v1878_v4, %s1668_s5 }
  0x99   : > { %369 = vrot.lane.b32.xlu0 %v1874_v2, %s1668_s5 }
  0x9b   : > { %373 = vrot.lane.b32.xlu1 %v220_v0, %s1668_s5 }
  0x9d   : > { %371 = vrot.lane.b32.xlu0 %v1880_v5, %s1668_s5 }
  0xdd   : > { %v241_v8 = vpop.permute.xlu1 %240 }
  0xdf   : > { %v1267_v9 = vpop.permute.xlu0 %1266 }
  0xe0   : > { %v1269_v10 = vunpack.i.h.bf16 %v1267_v9  ;;  %v1268_v11 = vunpack.i.l.bf16 %v1267_v9 }
  0xe1   : > { %v1277_v12 = vpop.permute.xlu1 %1276 }
  0xe2   : > { %v244_v13 = vsel %vm242_vm0, %v1268_v11, %v1269_v10  ;;  %v1279_v19 = vunpack.i.h.bf16 %v1277_v12  ;;  %v1278_v20 = vunpack.i.l.bf16 %v1277_v12 }
  0xe3   : > { %v1272_v14 = vpop.permute.xlu0 %1271  ;;  %v1082_v15 = vpack.c.bf16 %v244_v13, %v217_v1 }
  0xe4   : > { %v1274_v16 = vunpack.i.h.bf16 %v1272_v14  ;;  %v1273_v17 = vunpack.i.l.bf16 %v1272_v14  ;;  %v263_v33 = vsel %vm261_vm1, %v1278_v20, %v1279_v19 }
  0xe5   : > { %1083 = vmatprep.subr.bf16.mxu0 %v1082_v15  ;;  %v1287_v18 = vpop.permute.xlu1 %1286 }
  0xe6   : > { %v243_v21 = vsel %vm242_vm0, %v1273_v17, %v1268_v11  ;;  %v246_v22 = vsel %vm242_vm0, %v1274_v16, %v241_v8  ;;  %v245_v26 = vsel %vm242_vm0, %v1269_v10, %v1274_v16  ;;  %v1288_v27 = vunpack.i.l.bf16 %v1287_v18 }
  0xe7   : > { %v1282_v23 = vpop.permute.xlu0 %1281  ;;  %v1084_v24 = vpack.c.bf16 %v243_v21, %v1878_v4  ;;  %v1098_v25 = vpack.c.bf16 %v246_v22, %v1880_v5  ;;  %v1100_v30 = vpack.c.bf16 %v245_v26, %v1874_v2  ;;  %v1289_v40 = vunpack.i.h.bf16 %v1287_v18 }
  0xe8   : > { %v1284_v28 = vunpack.i.h.bf16 %v1282_v23  ;;  %v1283_v29 = vunpack.i.l.bf16 %v1282_v23  ;;  %v262_v38 = vsel %vm261_vm1, %v1288_v27, %v1278_v20 }
  0xe9   : > { %v1292_v31 = vpop.permute.xlu1 %1291  ;;  %1085 = vmatpush1.bf16.msra.mxu0 %v1084_v24  ;;  %1099 = vmatprep.subr.bf16.mxu1 %v1098_v25  ;;  %v264_v49 = vsel %vm261_vm1, %v1279_v19, %v1289_v40 }
  0xea   : > { %v1293_v32 = vunpack.i.l.bf16 %v1292_v31  ;;  %1101 = vmatpush1.bf16.msra.mxu1 %v1100_v30  ;;  %v282_v34 = vsel %vm280_vm2, %v1283_v29, %v1284_v28  ;;  %v1294_v35 = vunpack.i.h.bf16 %v1292_v31 }
  0xeb   : > { %v260_v36 = vpop.permute.xlu0 %259  ;;  %v1086_v37 = vpack.c.bf16 %v282_v34, %v263_v33 }
  0xec   : > { %v281_v39 = vsel %vm280_vm2, %v1293_v32, %v1283_v29  ;;  %v283_v44 = vsel %vm280_vm2, %v1284_v28, %v1294_v35  ;;  %v265_v45 = vsel %vm261_vm1, %v1289_v40, %v260_v36 }
  0xed   : > { %v1297_v41 = vpop.permute.xlu1 %1296  ;;  %1087 = vmatprep.subr.bf16.mxu0 %v1086_v37  ;;  %v1088_v42 = vpack.c.bf16 %v281_v39, %v262_v38  ;;  %v1104_v52 = vpack.c.bf16 %v283_v44, %v264_v49  ;;  %v1669_v49 = vmov 0.0|0.0  }
  0xee   : > { %v1299_v50 = vunpack.i.h.bf16 %v1297_v41  ;;  %v1298_v51 = vunpack.i.l.bf16 %v1297_v41 }
  0xef   : > { %v279_v43 = vpop.permute.xlu0 %278  ;;  %1089 = vmatpush1.bf16.msra.mxu0 %v1088_v42  ;;  %v221_v42 = vld [vmem:[#allocation5] sm:$0xff] }
  0xf0   : > { %v284_v46 = vsel %vm280_vm2, %v1294_v35, %v279_v43  ;;  %v301_v59 = vsel %vm299_vm3, %v1298_v51, %v1299_v50 }
  0xf1   : > { %v1102_v47 = vpack.c.bf16 %v284_v46, %v265_v45  ;;  %v1307_v48 = vpop.permute.xlu1 %1306 }
  0xf2   : > { %v1308_v54 = vunpack.i.l.bf16 %v1307_v48  ;;  %v1309_v2 = vunpack.i.h.bf16 %v1307_v48  ;;  %v222_v48 = vld [vmem:[#allocation5 + $0x8] sm:$0xff] }
  0xf3   : > { %v1302_v53 = vpop.permute.xlu0 %1301  ;;  %1103 = vmatprep.subr.bf16.mxu1 %v1102_v47 }
  0xf4   : > { %v1304_v55 = vunpack.i.h.bf16 %v1302_v53  ;;  %v1303_v56 = vunpack.i.l.bf16 %v1302_v53  ;;  %1105 = vmatpush1.bf16.msra.mxu1 %v1104_v52  ;;  %v300_v0 = vsel %vm299_vm3, %v1308_v54, %v1298_v51  ;;  %v302_v12 = vsel %vm299_vm3, %v1299_v50, %v1309_v2 }
  0xf5   : > { %v1312_v57 = vpop.permute.xlu1 %1311 }
  0xf6   : > { %v1313_v58 = vunpack.i.l.bf16 %v1312_v57  ;;  %v320_v60 = vsel %vm318_vm4, %v1303_v56, %v1304_v55  ;;  %v1314_v61 = vunpack.i.h.bf16 %v1312_v57 }
  0xf7   : > { %v298_v62 = vpop.permute.xlu0 %297  ;;  %v1090_v63 = vpack.c.bf16 %v320_v60, %v301_v59 }
  0xf8   : > { %v319_v1 = vsel %vm318_vm4, %v1313_v58, %v1303_v56  ;;  %v321_v6 = vsel %vm318_vm4, %v1304_v55, %v1314_v61  ;;  %v303_v8 = vsel %vm299_vm3, %v1309_v2, %v298_v62 }
  0xf9   : > { %v1317_v3 = vpop.permute.xlu1 %1316  ;;  %1091 = vmatprep.subr.bf16.mxu0 %v1090_v63  ;;  %v1092_v4 = vpack.c.bf16 %v319_v1, %v300_v0  ;;  %v1108_v15 = vpack.c.bf16 %v321_v6, %v302_v12 }
  0xfa   : > { %v1319_v13 = vunpack.i.h.bf16 %v1317_v3  ;;  %v1318_v14 = vunpack.i.l.bf16 %v1317_v3 }
  0xfb   : > { %v317_v5 = vpop.permute.xlu0 %316  ;;  %1093 = vmatpush1.bf16.msra.mxu0 %v1092_v4 }
  0xfc   : > { %v322_v9 = vsel %vm318_vm4, %v1314_v61, %v317_v5  ;;  %v339_v22 = vsel %vm337_vm5, %v1318_v14, %v1319_v13 }
  0xfd   : > { %v1106_v10 = vpack.c.bf16 %v322_v9, %v303_v8  ;;  %v1327_v11 = vpop.permute.xlu1 %1326 }
  0xfe   : > { %v1328_v17 = vunpack.i.l.bf16 %v1327_v11  ;;  %v1329_v29 = vunpack.i.h.bf16 %v1327_v11 }
  0xff   : > { %v1322_v16 = vpop.permute.xlu0 %1321  ;;  %1107 = vmatprep.subr.bf16.mxu1 %v1106_v10  ;;  %v224_v10 = vld [vmem:[#allocation7 + $0x8] sm:$0xff] }
 0x100   : > { %v1324_v18 = vunpack.i.h.bf16 %v1322_v16  ;;  %v1323_v19 = vunpack.i.l.bf16 %v1322_v16  ;;  %1109 = vmatpush1.bf16.msra.mxu1 %v1108_v15  ;;  %v338_v27 = vsel %vm337_vm5, %v1328_v17, %v1318_v14  ;;  %v340_v38 = vsel %vm337_vm5, %v1319_v13, %v1329_v29 }
 0x101   : > { %v1332_v20 = vpop.permute.xlu1 %1331 }
 0x102   : > { %v1333_v21 = vunpack.i.l.bf16 %v1332_v20  ;;  %v358_v23 = vsel %vm356_vm6, %v1323_v19, %v1324_v18  ;;  %v1334_v24 = vunpack.i.h.bf16 %v1332_v20 }
 0x103   : > { %v336_v25 = vpop.permute.xlu0 %335  ;;  %v1094_v26 = vpack.c.bf16 %v358_v23, %v339_v22 }
 0x104   : > { %v357_v28 = vsel %vm356_vm6, %v1333_v21, %v1323_v19  ;;  %v359_v33 = vsel %vm356_vm6, %v1324_v18, %v1334_v24  ;;  %v341_v34 = vsel %vm337_vm5, %v1329_v29, %v336_v25 }
 0x105   : > { %v368_v30 = vpop.permute.xlu1 %367  ;;  %1095 = vmatprep.subr.bf16.mxu0 %v1094_v26  ;;  %v1096_v31 = vpack.c.bf16 %v357_v28, %v338_v27  ;;  %v1112_v39 = vpack.c.bf16 %v359_v33, %v340_v38 }
 0x107   : > { %v355_v32 = vpop.permute.xlu0 %354  ;;  %1097 = vmatpush1.bf16.msra.mxu0 %v1096_v31 }
 0x108   : > { %v360_v35 = vsel %vm356_vm6, %v1334_v24, %v355_v32 }
 0x109   : > { %v1110_v36 = vpack.c.bf16 %v360_v35, %v341_v34  ;;  %v366_v37 = vpop.permute.xlu1 %365 }
 0x10a   : > { %v1950_v43 = vsel %vm375_vm7, %v366_v37, %v368_v30 }
 0x10b   : > { %v370_v40 = vpop.permute.xlu0 %369  ;;  %1111 = vmatprep.subr.bf16.mxu1 %v1110_v36 }
 0x10c   : > { %1113 = vmatpush1.bf16.msra.mxu1 %v1112_v39  ;;  %v1946_v41 = vsel %vm375_vm7, %v368_v30, %v370_v40 }
 0x10d   : > { %407 = vmatprep.subr.mxu0 %v1946_v41  ;;  %v374_v44 = vpop.permute.xlu1 %373 }
 0x10e   : > { %408 = vmatpush1.msra.mxu0 %v1950_v43 }
 0x10f   : > { %v372_v45 = vpop.permute.xlu0 %371  ;;  %1071 = vmatmul.mubr.msk.f32.vlgmr.msra.gmra.mrb[0].mxu0 %vm384_vm8, %v221_v42 }
 0x110   : > { %v379_v46 = vsel %vm375_vm7, %v372_v45, %v374_v44  ;;  %461 = vmatprep.mubr.f32.mxu0 %v1667_v7  ;;  %v1957_v47 = vsel %vm375_vm7, %v370_v40, %v372_v45 }
 0x111   : > { %484 = vmatprep.subr.mxu1 %v379_v46 }
 0x112   : > { %485 = vmatpush1.msra.mxu1 %v1957_v47 }
 0x113   : > { %1072 = vmatmul.mubr.msk.f32.gmra.mrb[2].mxu0 %vm384_vm8, %v222_v48  ;;  %1073 = vmatmul.mubr.msk.f32.vlgmr.msra.gmra.mrb[0].mxu1 %vm384_vm8, %v221_v42 }
 0x114   : > { %538 = vmatprep.mubr.f32.mxu1 %v1667_v7  ;;  %1150 = vmatprep.subr.bf16.mxu1 %v1669_v49 }
 0x115   : > { %1075 = vmatprep.mubr.msk.f32.mxu0 %vm785_vm9, %v224_v10 }
 0x117   : > { %1074 = vmatmul.mubr.msk.f32.gmra.mrb[2].mxu1 %vm384_vm8, %v222_v48 }
 0x118   : > { %1077 = vmatprep.mubr.msk.f32.mxu1 %vm785_vm9, %v224_v10 }
 0x1e2   : > { %v457_v50 = vpop.f32.mrb[0].mxu0 }
 0x1e3   : > { %v459_v51 = vpop.f32.mrb[1].mxu0  ;;  %v545_v52 = vmax.f32 %v457_v50, 0.0 }
 0x1e4   : > { %v546_v53 = vmax.f32 %v459_v51, 0.0 }
 0x1e6   : > { %v463_v54 = vpop.f32.mrb[2].mxu0  ;;  %v534_v55 = vpop.f32.mrb[0].mxu1 }
 0x1e7   : > { %v549_v56 = vmax.f32 %v463_v54, 0.0  ;;  %v547_v57 = vmax.f32 %v534_v55, 0.0  ;;  %v465_v58 = vpop.f32.mrb[3].mxu0  ;;  %v536_v59 = vpop.f32.mrb[1].mxu1 }
 0x1e8   : > { %v550_v60 = vmax.f32 %v465_v58, 0.0  ;;  %v548_v61 = vmax.f32 %v536_v59, 0.0 }
 0x1e9   : > { %v1335_v62 = vpack.i.bf16 %v547_v57, %v546_v53  ;;  %v1116_v63 = vpack.c.bf16 %v549_v56, %v545_v52  ;;  %v1375_v4 = vpack.i.bf16 %v549_v56, %v545_v52 }
 0x1ea   : > { %v540_v0 = vpop.f32.mrb[2].mxu1  ;;  %v1114_v1 = vpack.c.bf16 %v550_v60, %v546_v53 }
 0x1eb   : > { %v551_v2 = vmax.f32 %v540_v0, 0.0  ;;  %v542_v3 = vpop.f32.mrb[3].mxu1  ;;  %1336 = vrot.lane.b32.xlu0 %v1335_v62, %s1660_s20 }
 0x1ec   : > { %v552_v5 = vmax.f32 %v542_v3, 0.0  ;;  %1115 = vmatprep.subr.bf16.mxu0 %v1114_v1 }
 0x1ed   : > { %1117 = vmatpush1.bf16.msra.mxu0 %v1116_v63  ;;  %v1151_v6 = vpack.c.bf16 %v551_v2, %v547_v57  ;;  %v1410_v8 = vpack.i.bf16 %v551_v2, %v550_v60 }
 0x1ee   : > { %v1415_v9 = vpack.i.bf16 %v552_v5, %v548_v61 }
 0x1ef   : > { %1152 = vmatpush1.bf16.msra.mxu1 %v1151_v6  ;;  %1341 = vrot.lane.b32.xlu0 %v1335_v62, %s1661_s18 }
 0x1f0   : > { %1411 = vrot.lane.b32.xlu1 %v1410_v8, %s1660_s20  ;;  %1153 = vmatprep.subr.bf16.mxu1 %v1669_v49 }
 0x1f3   : > { %1346 = vrot.lane.b32.xlu0 %v1335_v62, %s1662_s17 }
 0x1f4   : > { %1416 = vrot.lane.b32.xlu1 %v1415_v9, %s1660_s20 }
 0x1f7   : > { %1351 = vrot.lane.b32.xlu0 %v1335_v62, %s1663_s26 }
 0x1f8   : > { %1421 = vrot.lane.b32.xlu1 %v1410_v8, %s1661_s18 }
 0x1fb   : > { %1356 = vrot.lane.b32.xlu0 %v1335_v62, %s1664_s28 }
 0x1fc   : > { %1426 = vrot.lane.b32.xlu1 %v1415_v9, %s1661_s18 }
 0x1ff   : > { %1361 = vrot.lane.b32.xlu0 %v1335_v62, %s1665_s22 }
 0x200   : > { %1431 = vrot.lane.b32.xlu1 %v1410_v8, %s1662_s17 }
 0x203   : > { %1366 = vrot.lane.b32.xlu0 %v1335_v62, %s1666_s4 }
 0x204   : > { %1436 = vrot.lane.b32.xlu1 %v1415_v9, %s1662_s17 }
 0x207   : > { %1371 = vrot.lane.b32.xlu0 %v1335_v62, %s1668_s5 }
 0x208   : > { %1441 = vrot.lane.b32.xlu1 %v1410_v8, %s1663_s26 }
 0x20b   : > { %1376 = vrot.lane.b32.xlu0 %v1375_v4, %s1660_s20  ;;  %s1585_s20 = sshll.u32 %s1670_s30, 4  ;;  %s1586_s20 = int_to_ptr.vmem [resolvable:$false] %s1585_s20 }
 0x20c   : > { %1446 = vrot.lane.b32.xlu1 %v1415_v9, %s1663_s26  ;;  %p1588_p5 = scmp.lt.s32.totalorder %s2107_s23, %s1586_s20 }
 0x20f   : > { %1381 = vrot.lane.b32.xlu0 %v1375_v4, %s1661_s18  ;;  %s1587_s18 = scalar_lea.vmem %s1586_s20, 1536 }
 0x210   : > { %1451 = vrot.lane.b32.xlu1 %v1410_v8, %s1664_s28  ;;  %p1589_p9 = scmp.lt.s32.totalorder %s1587_s18, %s1581_s29 }
 0x212   : > { %p1590_p12 = por %p1589_p9, %p1588_p5 }
 0x213   : > { %1386 = vrot.lane.b32.xlu0 %v1375_v4, %s1662_s17 }
 0x214   : > { %1456 = vrot.lane.b32.xlu1 %v1415_v9, %s1664_s28  ;;  %p1591_p2 = pnand %p1590_p12, %p1584_p3 }
 0x217   : > { %1391 = vrot.lane.b32.xlu0 %v1375_v4, %s1663_s26 }
 0x218   : > { %1461 = vrot.lane.b32.xlu1 %v1410_v8, %s1665_s22 }
 0x21b   : > { %1396 = vrot.lane.b32.xlu0 %v1375_v4, %s1664_s28 }
 0x21c   : > { %1466 = vrot.lane.b32.xlu1 %v1415_v9, %s1665_s22 }
 0x21f   : > { %1401 = vrot.lane.b32.xlu0 %v1375_v4, %s1665_s22 }
 0x220   : > { %1471 = vrot.lane.b32.xlu1 %v1410_v8, %s1666_s4 }
 0x223   : > { %1406 = vrot.lane.b32.xlu0 %v1375_v4, %s1666_s4 }
 0x224   : > { %1476 = vrot.lane.b32.xlu1 %v1415_v9, %s1666_s4 }
 0x227   : > { %1486 = vrot.lane.b32.xlu0 %v1375_v4, %s1668_s5 }
 0x228   : > { %1481 = vrot.lane.b32.xlu1 %v1410_v8, %s1668_s5 }
 0x22c   : > { %1491 = vrot.lane.b32.xlu1 %v1415_v9, %s1668_s5 }
 0x25d   : > { %v2000_v11 = vpop.permute.xlu0 %1336 }
 0x25e   : > { %v1339_v12 = vunpack.i.h.bf16 %v2000_v11  ;;  %v1338_v13 = vunpack.i.l.bf16 %v2000_v11 }
 0x260   : > { %v578_v19 = vsel %vm242_vm0, %v1338_v13, %v1339_v12 }
 0x261   : > { %v2004_v14 = vpop.permute.xlu0 %1341 }
 0x262   : > { %v1412_v15 = vpop.permute.xlu1 %1411  ;;  %v1344_v32 = vunpack.i.h.bf16 %v2004_v14  ;;  %v1343_v57 = vunpack.i.l.bf16 %v2004_v14 }
 0x263   : > { %v1414_v16 = vunpack.i.h.bf16 %v1412_v15  ;;  %v1413_v17 = vunpack.i.l.bf16 %v1412_v15 }
 0x264   : > { %v606_v8 = vsel %vm261_vm1, %v1343_v57, %v1344_v32 }
 0x265   : > { %v2006_v18 = vpop.permute.xlu0 %1346  ;;  %v581_v20 = vsel %vm242_vm0, %v1413_v17, %v1414_v16 }
 0x266   : > { %v1417_v21 = vpop.permute.xlu1 %1416  ;;  %v1118_v22 = vpack.c.bf16 %v581_v20, %v578_v19  ;;  %v1349_v45 = vunpack.i.h.bf16 %v2006_v18  ;;  %v1348_v4 = vunpack.i.l.bf16 %v2006_v18 }
 0x267   : > { %v1419_v23 = vunpack.i.h.bf16 %v1417_v21  ;;  %v1418_v24 = vunpack.i.l.bf16 %v1417_v21 }
 0x268   : > { %1119 = vmatprep.subr.bf16.mxu0 %v1118_v22 }
 0x269   : > { %v579_v25 = vsel %vm242_vm0, %v1339_v12, %v1418_v24  ;;  %v582_v26 = vsel %vm242_vm0, %v1414_v16, %v1419_v23  ;;  %v2012_v27 = vpop.permute.xlu0 %1351 }
 0x26a   : > { %v1154_v28 = vpack.c.bf16 %v582_v26, %v579_v25  ;;  %v1422_v29 = vpop.permute.xlu1 %1421  ;;  %v1354_v59 = vunpack.i.h.bf16 %v2012_v27  ;;  %v634_v26 = vsel %vm280_vm2, %v1348_v4, %v1349_v45 }
 0x26b   : > { %v1424_v33 = vunpack.i.h.bf16 %v1422_v29  ;;  %v1423_v54 = vunpack.i.l.bf16 %v1422_v29 }
 0x26c   : > { %1155 = vmatpush1.bf16.msra.mxu1 %v1154_v28 }
 0x26d   : > { %v2014_v30 = vpop.permute.xlu0 %1356  ;;  %1156 = vmatprep.subr.bf16.mxu1 %v1669_v49  ;;  %v609_v63 = vsel %vm261_vm1, %v1423_v54, %v1424_v33 }
 0x26e   : > { %v1427_v31 = vpop.permute.xlu1 %1426  ;;  %v1122_v14 = vpack.c.bf16 %v609_v63, %v606_v8  ;;  %v1359_v23 = vunpack.i.h.bf16 %v2014_v30 }
 0x26f   : > { %v1429_v34 = vunpack.i.h.bf16 %v1427_v31  ;;  %v1428_v35 = vunpack.i.l.bf16 %v1427_v31 }
 0x271   : > { %v607_v36 = vsel %vm261_vm1, %v1344_v32, %v1428_v35  ;;  %v610_v37 = vsel %vm261_vm1, %v1424_v33, %v1429_v34  ;;  %v2020_v38 = vpop.permute.xlu0 %1361 }
 0x272   : > { %v1157_v39 = vpack.c.bf16 %v610_v37, %v607_v36  ;;  %v2022_v40 = vpop.permute.xlu1 %1431 }
 0x273   : > { %v1434_v46 = vunpack.i.h.bf16 %v2022_v40  ;;  %v1433_v0 = vunpack.i.l.bf16 %v2022_v40 }
 0x274   : > { %1158 = vmatpush1.bf16.msra.mxu1 %v1157_v39 }
 0x275   : > { %v2024_v42 = vpop.permute.xlu0 %1366  ;;  %1159 = vmatprep.subr.bf16.mxu1 %v1669_v49 }
 0x276   : > { %v1437_v44 = vpop.permute.xlu1 %1436 }
 0x277   : > { %v1439_v48 = vunpack.i.h.bf16 %v1437_v44  ;;  %v1438_v50 = vunpack.i.l.bf16 %v1437_v44  ;;  %v1358_v44 = vunpack.i.l.bf16 %v2014_v30  ;;  %v1363_v30 = vunpack.i.l.bf16 %v2020_v38 }
 0x279   : > { %v635_v51 = vsel %vm280_vm2, %v1349_v45, %v1438_v50  ;;  %v638_v52 = vsel %vm280_vm2, %v1434_v46, %v1439_v48  ;;  %v2031_v53 = vpop.permute.xlu0 %1371 }
 0x27a   : > { %v1160_v55 = vpack.c.bf16 %v638_v52, %v635_v51  ;;  %v2033_v56 = vpop.permute.xlu1 %1441 }
 0x27b   : > { %v1444_v1 = vunpack.i.h.bf16 %v2033_v56  ;;  %v1443_v15 = vunpack.i.l.bf16 %v2033_v56 }
 0x27c   : > { %1161 = vmatpush1.bf16.msra.mxu1 %v1160_v55 }
 0x27d   : > { %v1377_v58 = vpop.permute.xlu0 %1376  ;;  %1162 = vmatprep.subr.bf16.mxu1 %v1669_v49 }
 0x27e   : > { %v1379_v60 = vunpack.i.h.bf16 %v1377_v58  ;;  %v1378_v61 = vunpack.i.l.bf16 %v1377_v58  ;;  %v1447_v62 = vpop.permute.xlu1 %1446 }
 0x27f   : > { %v1449_v2 = vunpack.i.h.bf16 %v1447_v62  ;;  %v1448_v3 = vunpack.i.l.bf16 %v1447_v62 }
 0x280   : > { %v577_v5 = vsel %vm242_vm0, %v1378_v61, %v1338_v13  ;;  %v580_v6 = vsel %vm242_vm0, %v1379_v60, %v1413_v17  ;;  %v637_v13 = vsel %vm280_vm2, %v1433_v0, %v1434_v46  ;;  %v1353_v17 = vunpack.i.l.bf16 %v2012_v27 }
 0x281   : > { %v1120_v9 = vpack.c.bf16 %v580_v6, %v577_v5  ;;  %v663_v10 = vsel %vm299_vm3, %v1354_v59, %v1448_v3  ;;  %v666_v11 = vsel %vm299_vm3, %v1444_v1, %v1449_v2  ;;  %v1382_v12 = vpop.permute.xlu0 %1381  ;;  %v1126_v32 = vpack.c.bf16 %v637_v13, %v634_v26 }
 0x282   : > { %v1163_v16 = vpack.c.bf16 %v666_v11, %v663_v10  ;;  %v1384_v19 = vunpack.i.h.bf16 %v1382_v12  ;;  %v1383_v20 = vunpack.i.l.bf16 %v1382_v12  ;;  %v2048_v21 = vpop.permute.xlu1 %1451  ;;  %v665_v27 = vsel %vm299_vm3, %v1443_v15, %v1444_v1 }
 0x283   : > { %1121 = vmatpush1.bf16.msra.mxu0 %v1120_v9  ;;  %v1454_v33 = vunpack.i.h.bf16 %v2048_v21  ;;  %v1453_v34 = vunpack.i.l.bf16 %v2048_v21  ;;  %v662_v40 = vsel %vm299_vm3, %v1353_v17, %v1354_v59  ;;  %v1364_v59 = vunpack.i.h.bf16 %v2020_v38 }
 0x284   : > { %v605_v18 = vsel %vm261_vm1, %v1383_v20, %v1343_v57  ;;  %v608_v22 = vsel %vm261_vm1, %v1384_v19, %v1423_v54  ;;  %1164 = vmatpush1.bf16.msra.mxu1 %v1163_v16  ;;  %1123 = vmatprep.subr.bf16.mxu0 %v1122_v14  ;;  %v1130_v56 = vpack.c.bf16 %v665_v27, %v662_v40  ;;  %v1369_v9 = vunpack.i.h.bf16 %v2024_v42 }
 0x285   : > { %v1124_v24 = vpack.c.bf16 %v608_v22, %v605_v18  ;;  %v1387_v25 = vpop.permute.xlu0 %1386  ;;  %1165 = vmatprep.subr.bf16.mxu1 %v1669_v49  ;;  %v693_v60 = vsel %vm318_vm4, %v1453_v34, %v1454_v33  ;;  %v690_v1 = vsel %vm318_vm4, %v1358_v44, %v1359_v23  ;;  %v718_v12 = vsel %vm337_vm5, %v1363_v30, %v1364_v59 }
 0x286   : > { %v1389_v28 = vunpack.i.h.bf16 %v1387_v25  ;;  %v1388_v29 = vunpack.i.l.bf16 %v1387_v25  ;;  %v1457_v31 = vpop.permute.xlu1 %1456  ;;  %v1134_v5 = vpack.c.bf16 %v693_v60, %v690_v1  ;;  %v1368_v14 = vunpack.i.l.bf16 %v2024_v42 }
 0x287   : > { %v1459_v35 = vunpack.i.h.bf16 %v1457_v31  ;;  %v1458_v36 = vunpack.i.l.bf16 %v1457_v31  ;;  %1125 = vmatpush1.bf16.msra.mxu0 %v1124_v24 }
 0x288   : > { %v633_v37 = vsel %vm280_vm2, %v1388_v29, %v1348_v4  ;;  %v636_v39 = vsel %vm280_vm2, %v1389_v28, %v1433_v0  ;;  %1127 = vmatprep.subr.bf16.mxu0 %v1126_v32  ;;  %v746_v29 = vsel %vm356_vm6, %v1368_v14, %v1369_v9 }
 0x289   : > { %v1128_v45 = vpack.c.bf16 %v636_v39, %v633_v37  ;;  %v691_v46 = vsel %vm318_vm4, %v1359_v23, %v1458_v36  ;;  %v694_v48 = vsel %vm318_vm4, %v1454_v33, %v1459_v35  ;;  %v1392_v50 = vpop.permute.xlu0 %1391  ;;  %v1374_v37 = vunpack.i.h.bf16 %v2031_v53 }
 0x28a   : > { %v1166_v51 = vpack.c.bf16 %v694_v48, %v691_v46  ;;  %v1394_v52 = vunpack.i.h.bf16 %v1392_v50  ;;  %v1393_v54 = vunpack.i.l.bf16 %v1392_v50  ;;  %v1462_v55 = vpop.permute.xlu1 %1461 }
 0x28b   : > { %v1464_v57 = vunpack.i.h.bf16 %v1462_v55  ;;  %v1463_v58 = vunpack.i.l.bf16 %v1462_v55  ;;  %1129 = vmatpush1.bf16.msra.mxu0 %v1128_v45 }
 0x28c   : > { %v661_v61 = vsel %vm299_vm3, %v1393_v54, %v1353_v17  ;;  %v664_v62 = vsel %vm299_vm3, %v1394_v52, %v1443_v15  ;;  %1167 = vmatpush1.bf16.msra.mxu1 %v1166_v51  ;;  %1131 = vmatprep.subr.bf16.mxu0 %v1130_v56 }
 0x28d   : > { %v1132_v63 = vpack.c.bf16 %v664_v62, %v661_v61  ;;  %v1397_v0 = vpop.permute.xlu0 %1396  ;;  %1168 = vmatprep.subr.bf16.mxu1 %v1669_v49  ;;  %v721_v38 = vsel %vm337_vm5, %v1463_v58, %v1464_v57 }
 0x28e   : > { %v1399_v2 = vunpack.i.h.bf16 %v1397_v0  ;;  %v1398_v3 = vunpack.i.l.bf16 %v1397_v0  ;;  %v1467_v4 = vpop.permute.xlu1 %1466  ;;  %v1138_v22 = vpack.c.bf16 %v721_v38, %v718_v12 }
 0x28f   : > { %v1469_v6 = vunpack.i.h.bf16 %v1467_v4  ;;  %v1468_v8 = vunpack.i.l.bf16 %v1467_v4  ;;  %1133 = vmatpush1.bf16.msra.mxu0 %v1132_v63  ;;  %v223_v4 = vld [vmem:[#allocation7] sm:$0xff] }
 0x290   : > { %v689_v10 = vsel %vm318_vm4, %v1398_v3, %v1358_v44  ;;  %v692_v11 = vsel %vm318_vm4, %v1399_v2, %v1453_v34  ;;  %1135 = vmatprep.subr.bf16.mxu0 %v1134_v5  ;;  %v1373_v44 = vunpack.i.l.bf16 %v2031_v53  ;;  %v226_v5 = vld [vmem:[#allocation7 + $0x18] sm:$0xff] }
 0x291   : > { %v1136_v15 = vpack.c.bf16 %v692_v11, %v689_v10  ;;  %v719_v16 = vsel %vm337_vm5, %v1364_v59, %v1468_v8  ;;  %v722_v19 = vsel %vm337_vm5, %v1464_v57, %v1469_v6  ;;  %v1402_v20 = vpop.permute.xlu0 %1401 }
 0x292   : > { %v1169_v21 = vpack.c.bf16 %v722_v19, %v719_v16  ;;  %v1404_v13 = vunpack.i.h.bf16 %v1402_v20  ;;  %v1403_v17 = vunpack.i.l.bf16 %v1402_v20  ;;  %v1472_v18 = vpop.permute.xlu1 %1471  ;;  %v774_v53 = vsel %vm375_vm7, %v1373_v44, %v1374_v37 }
 0x293   : > { %v1474_v23 = vunpack.i.h.bf16 %v1472_v18  ;;  %v1473_v24 = vunpack.i.l.bf16 %v1472_v18  ;;  %1137 = vmatpush1.bf16.msra.mxu0 %v1136_v15 }
 0x294   : > { %v717_v25 = vsel %vm337_vm5, %v1403_v17, %v1363_v30  ;;  %v720_v26 = vsel %vm337_vm5, %v1404_v13, %v1463_v58  ;;  %1170 = vmatpush1.bf16.msra.mxu1 %v1169_v21  ;;  %1139 = vmatprep.subr.bf16.mxu0 %v1138_v22 }
 0x295   : > { %v1140_v42 = vpack.c.bf16 %v720_v26, %v717_v25  ;;  %v1407_v28 = vpop.permute.xlu0 %1406  ;;  %v749_v31 = vsel %vm356_vm6, %v1473_v24, %v1474_v23  ;;  %1171 = vmatprep.subr.bf16.mxu1 %v1669_v49 }
 0x296   : > { %v1409_v32 = vunpack.i.h.bf16 %v1407_v28  ;;  %v1408_v27 = vunpack.i.l.bf16 %v1407_v28  ;;  %v1477_v33 = vpop.permute.xlu1 %1476  ;;  %v1142_v34 = vpack.c.bf16 %v749_v31, %v746_v29 }
 0x297   : > { %v1479_v35 = vunpack.i.h.bf16 %v1477_v33  ;;  %v1478_v36 = vunpack.i.l.bf16 %v1477_v33  ;;  %1141 = vmatpush1.bf16.msra.mxu0 %v1140_v42 }
 0x298   : > { %v745_v39 = vsel %vm356_vm6, %v1408_v27, %v1368_v14  ;;  %v748_v40 = vsel %vm356_vm6, %v1409_v32, %v1473_v24  ;;  %1143 = vmatprep.subr.bf16.mxu0 %v1142_v34 }
 0x299   : > { %v1144_v45 = vpack.c.bf16 %v748_v40, %v745_v39  ;;  %v747_v46 = vsel %vm356_vm6, %v1369_v9, %v1478_v36  ;;  %v750_v48 = vsel %vm356_vm6, %v1474_v23, %v1479_v35  ;;  %v1487_v50 = vpop.permute.xlu0 %1486 }
 0x29a   : > { %v1172_v51 = vpack.c.bf16 %v750_v48, %v747_v46  ;;  %v1489_v52 = vunpack.i.h.bf16 %v1487_v50  ;;  %v1488_v54 = vunpack.i.l.bf16 %v1487_v50  ;;  %v1482_v55 = vpop.permute.xlu1 %1481 }
 0x29b   : > { %v1484_v56 = vunpack.i.h.bf16 %v1482_v55  ;;  %v1483_v57 = vunpack.i.l.bf16 %v1482_v55  ;;  %1145 = vmatpush1.bf16.msra.mxu0 %v1144_v45 }
 0x29c   : > { %v773_v58 = vsel %vm375_vm7, %v1488_v54, %v1373_v44  ;;  %1173 = vmatpush1.bf16.msra.mxu1 %v1172_v51 }
 0x29d   : > { %v776_v60 = vsel %vm375_vm7, %v1489_v52, %v1483_v57  ;;  %v777_v59 = vsel %vm375_vm7, %v1483_v57, %v1484_v56  ;;  %1174 = vmatprep.subr.bf16.mxu1 %v1669_v49  ;;  %v225_v49 = vld [vmem:[#allocation7 + $0x10] sm:$0xff] }
 0x29e   : > { %v1148_v30 = vpack.c.bf16 %v776_v60, %v773_v58  ;;  %v1492_v61 = vpop.permute.xlu1 %1491  ;;  %v1146_v62 = vpack.c.bf16 %v777_v59, %v774_v53 }
 0x29f   : > { %v1494_v63 = vunpack.i.h.bf16 %v1492_v61  ;;  %v1493_v0 = vunpack.i.l.bf16 %v1492_v61 }
 0x2a0   : > { %1147 = vmatprep.subr.bf16.mxu0 %v1146_v62 }
 0x2a1   : > { %v775_v1 = vsel %vm375_vm7, %v1374_v37, %v1493_v0  ;;  %v778_v2 = vsel %vm375_vm7, %v1484_v56, %v1494_v63  ;;  %1149 = vmatpush1.bf16.msra.mxu0 %v1148_v30 }
 0x2a2   : > { %v1175_v3 = vpack.c.bf16 %v778_v2, %v775_v1  ;;  %828 = vmatprep.subr.mxu0 %v1946_v41 }
 0x2a4   : > { %1176 = vmatpush1.bf16.msra.mxu1 %v1175_v3 }
 0x2a5   : > { %829 = vmatpush1.msra.mxu0 %v1950_v43  ;;  %905 = vmatprep.subr.mxu1 %v1667_v7 }
 0x2a6   : > { %857 = vmatmul.mubr.f32.vlgmr.msra.gmra.mrb[4].mxu0 %v223_v4 }
 0x2a7   : > { %1076 = vmatprep.mubr.msk.f32.mxu0 %vm785_vm9, %v226_v5 }
 0x2a8   : > { %906 = vmatpush1.msra.mxu1 %v1957_v47 }
 0x2a9   : > { %934 = vmatmul.mubr.f32.vlgmr.msra.gmra.mrb[4].mxu1 %v223_v4 }
 0x2aa   : > { %863 = vmatmul.mubr.f32.gmra.mrb[6].mxu0 %v225_v49  ;;  %1078 = vmatprep.mubr.msk.f32.mxu1 %vm785_vm9, %v226_v5 }
 0x2ad   : > { %939 = vmatmul.mubr.f32.gmra.mrb[6].mxu1 %v225_v49 }
 0x379   : > { %v858_v41 = vpop.f32.mrb[4].mxu0 }
 0x37a   : > { %v944_v6 = vmax.f32 %v858_v41, 0.0  ;;  %v860_v8 = vpop.f32.mrb[5].mxu0 }
 0x37b   : > { %v945_v38 = vmax.f32 %v860_v8, 0.0 }
 0x37c   : > { %950 = vst [vmem:[%s215_s8] sm:$0xff] %v944_v6  ;;  %v935_v7 = vpop.f32.mrb[4].mxu1 }
 0x37d   : > { %951 = vst [vmem:[%s215_s8 + $0x8] sm:$0xff] %v945_v38  ;;  %v946_v43 = vmax.f32 %v935_v7, 0.0  ;;  %v937_v9 = vpop.f32.mrb[5].mxu1  ;;  %v864_v47 = vpop.f32.mrb[6].mxu0 }
 0x37e   : > { %v947_v10 = vmax.f32 %v864_v47, 0.0  ;;  %v866_v11 = vpop.f32.mrb[7].mxu0 }
 0x37f   : > { %952 = vst [vmem:[%s215_s8 + $0x10] sm:$0xff] %v946_v43  ;;  %v948_v12 = vmax.f32 %v866_v11, 0.0 }
 0x380   : > { %953 = vst [vmem:[%s215_s8 + $0x18] sm:$0xff] %v947_v10  ;;  %v940_v14 = vpop.f32.mrb[6].mxu1 }
 0x381   : > { %954 = vst [vmem:[%s215_s8 + $0x20] sm:$0xff] %v948_v12  ;;  %v949_v15 = vmax.f32 %v940_v14, 0.0  ;;  %v942_v16 = vpop.f32.mrb[7].mxu1 }
 0x383   : > { %955 = vst [vmem:[%s215_s8 + $0x28] sm:$0xff] %v949_v15 }
 0x384   : > { %1594 = shalt.err (!%p1591_p2)
}
 0x385   : > { %s1595_s17 = scalar_lea.hbm %s2112_s27, 768  ;;  %s1599_s22 = scalar_lea.hbm %s2159_s3, 1536 }
 0x386   : > { %p1596_p13 = scmp.ne.s32.totalorder %s2112_s27, %s1595_s17  ;;  %p1600_p4 = scmp.lt.u32.totalorder %s2112_s27, %s2159_s3 }
 0x387   : > { %p1601_p7 = scmp.lt.u32.totalorder %s1599_s22, %s1595_s17  ;;  %p1603_p8 = scmp.lt.u32.totalorder %s1595_s17, %s2112_s27 }
 0x388   : > { %p1597_p6 = pnand %p1596_p13, %p2173_p0 }
 0x389   : > { %p1602_p11 = por %p1601_p7, %p1600_p4 }
 0x38a   : > { %p1598_p10 = pneg %p1597_p6 }
 0x38b   : > { %p1604_p1 = por %p1603_p8, %p1602_p11 }
 0x38d   : > { %p1605_p3 = pnand %p1604_p1, %p1598_p10 }
 0x38f   : > { %1608 = shalt.err (!%p1605_p3)
}
 0x390   : > { %s1671_s7 = smov 384   ;;  %s1672_s8 = smov 24  }
 0x391   : > { %1192 = dma.vmem_to_hbm [thread:$0]  (%p2173_p0), %s2107_s23, 768, %s2112_s27, %s957_s16, %s1671_s7, %s1671_s7, %s1672_s8  }
 0x392 PF: > { %s985_s11 = sand.u32 1, %s1639_s12   ;;  %p2174_p5 = scmp.ne.s32.totalorder %s2164_s19, 0 }
 0x393   : > { %p2175_p9 = scmp.ge.s32.totalorder %s1651_s15, 2  ;;  %s986_s25 = scalar_lea.sflag [#allocation4], %s985_s11 }
 0x395   : > { %p1206_p12 = pnand %p2175_p9, %p2174_p5 }
 0x397   : > { %1634 = dma.done.wait (!%p1206_p12), %s986_s25, 768  }
 0x398   : > { %1636 = vsyncadd (!%p1206_p12), %s986_s25, 4294966528  ;;  %p17_p2 = scmp.ge.s32.totalorder %s1803_s6, 4   ;;  %s2176_s12 = smov %s1643_s13 }
 0x399   : > { %s2177_s13 = smov %s1647_s14  ;;  %s2178_s14 = smov %s1812_s9 }
 0x39a   : > { %s2179_s15 = smov %s1803_s6  ;;  %19 = sbr.rel (!%p17_p2) target bundleno = 6 (0x6), region = 85 }
 0x3a1   :  { %991 = vsyncpa [#allocation3], 1 }
 0x3a2   :  { %993 = vsyncpa [#allocation3 + $0x1], 1 }
 0x3a3   :  { %994 = vsyncpa [#allocation6], 1 }
 0x3a4   :  { %995 = vsyncpa [#allocation4], 1 }
 0x3a5   :  { %997 = vsyncpa [#allocation4 + $0x1], 1 }

</bundles_post_ra>
